<compile_context>
chip_gen: v7x
topology: tpu7x:2x2x1
jax: 0.10.0
libtpu: 0.0.40
codegen_flags: <defaults>
</compile_context>

<pallas_src>
import functools
import math

import jax
import jax.numpy as jnp
from jax.experimental import pallas as pl
from jax.experimental.pallas import tpu as pltpu


def _attention_head_kernel(x_ref, wqkv_ref, bqkv_ref, out_ref, probs_ref,
                           q_scr, k_scr, v_scr, *, exp_dtype):
    """Grid = (batch_blocks, q_tiles).

    qi == 0: fused QKV projection for the whole batch block -> bf16 VMEM scratch.
    every qi: one (block_q, S) slab of scores / softmax / PV.
    """
    qi = pl.program_id(1)
    d = out_ref.shape[-1]
    tq = out_ref.shape[1]

    # ---- fused QKV projection (1/sqrt(D) already folded into the Q weight/bias).
    @pl.when(qi == 0)
    def _():
        qkv = jnp.einsum("bsh,hn->bsn", x_ref[...], wqkv_ref[...],
                         preferred_element_type=jnp.float32) + bqkv_ref[...]
        qkv = qkv.astype(jnp.bfloat16)
        q_scr[...] = qkv[..., :d]
        k_scr[...] = qkv[..., d:2 * d]
        v_scr[...] = qkv[..., 2 * d:]

    # ---- scores for this q tile: (TB, tq, S), f32 accumulation on the MXU.
    q_start = pl.multiple_of(qi * tq, tq)
    q_blk = q_scr[:, pl.ds(q_start, tq), :]
    scores = jnp.einsum("bqd,bkd->bqk", q_blk, k_scr[...],
                        preferred_element_type=jnp.float32)

    # ---- softmax.  Row-max kept (scores are unbounded with plain 1/sqrt(D) scaling).
    #      exp in bf16 on v6e/v7x (bf16 EUP), f32 on v5e; sum/normalize in f32.
    m = jnp.max(scores, axis=-1, keepdims=True)
    e = jnp.exp((scores - m).astype(exp_dtype))
    denom = jnp.sum(e, axis=-1, keepdims=True, dtype=jnp.float32)
    inv = pl.reciprocal(denom)  # exact: probs is an exposed output, rows must sum to ~1

    # ---- unnormalized PV first (MXU overlaps the row-sum / reciprocal); normalize the
    #      (tq, D) output instead of the (tq, S) probs on the out path.
    out = jnp.einsum("bqk,bkd->bqd", e.astype(jnp.bfloat16), v_scr[...],
                     preferred_element_type=jnp.float32)
    out_ref[...] = (out * inv).astype(out_ref.dtype)
    probs_ref[...] = (e.astype(jnp.float32) * inv).astype(probs_ref.dtype)
    # TODO(synk): dropout on attention_probs is identity in eval mode; training-mode
    # dropout is not implemented here.


def _tpu_generation_info():
    """Returns (vmem_capacity_bytes, has_bf16_eup, multi_tensorcore)."""
    kind = ""
    try:
        kind = jax.devices()[0].device_kind.lower()
    except Exception:
        pass
    vmem = None
    try:
        vmem = int(pltpu.get_tpu_info().vmem_capacity_bytes)
    except Exception:
        vmem = None
    if not vmem:
        # v7x TensorCores have 64 MiB of VMEM; v4/v5/v6 generations have 128 MiB.
        vmem = (64 if ("v7" in kind or "7x" in kind) else 128) * 1024 * 1024
    has_bf16_eup = any(t in kind for t in ("v6", "v7", "7x"))       # not v4/v5e/v5p
    multi_tc = any(t in kind for t in ("v4", "v5p", "v7", "7x"))    # megacore chips
    return vmem, has_bf16_eup, multi_tc


def _choose_tiling(B, S, H, D, probs_itemsize, out_itemsize, vmem_budget, multi_tc):
    """Pick (block_b, block_q) maximizing the block under an explicit VMEM footprint."""

    def footprint(bb, tq):
        x_blk = 2 * bb * S * H * 2                      # bf16 input, double-buffered
        w_blk = H * 3 * D * 2 + 3 * D * 4               # fused weights + bias (resident)
        qkv_scr = 3 * bb * S * D * 2                    # bf16 Q/K/V scratch
        qkv_tmp = bb * S * 3 * D * 4                    # f32 projection temporary (qi==0)
        sm_tmp = 3 * bb * tq * S * 4                    # scores / e / probs temporaries
        probs_blk = 2 * bb * tq * S * probs_itemsize    # double-buffered probs output
        out_blk = 2 * bb * tq * D * out_itemsize        # double-buffered out output
        return x_blk + w_blk + qkv_scr + qkv_tmp + sm_tmp + probs_blk + out_blk

    # q-tile candidates: divisors of S that are sublane-aligned (or S itself), <= 512.
    tq_cands = [t for t in range(min(S, 512), 0, -1)
                if S % t == 0 and (t % 8 == 0 or t == S)]
    if not tq_cands:
        tq_cands = [S]

    bb_cands = [b for b in range(B, 0, -1) if B % b == 0]
    if multi_tc and B >= 2:
        # Prefer a batch grid extent >= 2 so both TensorCores are fed (batch is the
        # "parallel" axis).  Single-TC chips just maximize the block.
        pref = [b for b in bb_cands if B // b >= 2]
        bb_cands = pref + [b for b in bb_cands if b not in pref]

    for bb in bb_cands:
        for tq in tq_cands:
            if footprint(bb, tq) <= vmem_budget:
                return bb, tq
    return 1, tq_cands[-1]  # best effort for very large S


def attention_head(x, wq, bq, wk, bk, wv, bv, *, block_b=None, block_q=None,
                   probs_dtype=None):
    """
    x:  (B, S, H) float32
    wq/wk/wv: (H, D) float32  (already transposed from torch's (D, H))
    bq/bk/bv: (1, D) float32
    probs_dtype: dtype of the returned attention_probs (default x.dtype; bf16 halves
                 the dominant HBM writeback if the consumer tolerates it).
    returns (attention_output (B, S, D), attention_probs (B, S, S)).
    """
    B, S, H = x.shape
    D = wq.shape[1]
    out_dtype = x.dtype
    probs_dtype = jnp.dtype(out_dtype if probs_dtype is None else probs_dtype)

    vmem_cap, has_bf16_eup, multi_tc = _tpu_generation_info()
    vmem_budget = int(vmem_cap * 0.65)   # block-selection budget (headroom for scratch)
    vmem_limit = int(vmem_cap * 0.80)    # scoped VMEM limit handed to the compiler

    auto_bb, auto_tq = _choose_tiling(
        B, S, H, D, probs_dtype.itemsize, jnp.dtype(out_dtype).itemsize,
        vmem_budget, multi_tc)
    block_b = auto_bb if block_b is None else block_b
    block_q = auto_tq if block_q is None else block_q
    assert B % block_b == 0 and S % block_q == 0
    grid = (B // block_b, S // block_q)

    # Fuse the three projections (fold 1/sqrt(D) into Q); bf16 MXU inputs halve HBM reads.
    scale = 1.0 / math.sqrt(D)
    w_qkv = jnp.concatenate([wq * scale, wk, wv], axis=1).astype(jnp.bfloat16)  # (H, 3D)
    b_qkv = jnp.concatenate([bq * scale, bk, bv], axis=1).astype(jnp.float32)   # (1, 3D)
    x_bf = x.astype(jnp.bfloat16)

    exp_dtype = jnp.bfloat16 if has_bf16_eup else jnp.float32
    kernel = functools.partial(_attention_head_kernel, exp_dtype=exp_dtype)

    out_shapes = (
        jax.ShapeDtypeStruct((B, S, D), out_dtype),
        jax.ShapeDtypeStruct((B, S, S), probs_dtype),
    )
    cost = pl.CostEstimate(
        flops=2 * B * S * H * 3 * D + 4 * B * S * S * D,
        transcendentals=B * S * S,
        bytes_accessed=(int(x_bf.size) * 2 + int(w_qkv.size) * 2 + int(b_qkv.size) * 4
                        + B * S * D * jnp.dtype(out_dtype).itemsize
                        + B * S * S * probs_dtype.itemsize),
    )

    return pl.pallas_call(
        kernel,
        out_shape=out_shapes,
        grid_spec=pltpu.PrefetchScalarGridSpec(
            num_scalar_prefetch=0,
            grid=grid,
            in_specs=[
                pl.BlockSpec((block_b, S, H), lambda b, q: (b, 0, 0)),
                pl.BlockSpec((H, 3 * D), lambda b, q: (0, 0)),
                pl.BlockSpec((1, 3 * D), lambda b, q: (0, 0)),
            ],
            out_specs=[
                pl.BlockSpec((block_b, block_q, D), lambda b, q: (b, q, 0)),
                pl.BlockSpec((block_b, block_q, S), lambda b, q: (b, q, 0)),
            ],
            scratch_shapes=[
                pltpu.VMEM((block_b, S, D), jnp.bfloat16),   # Q (pre-scaled)
                pltpu.VMEM((block_b, S, D), jnp.bfloat16),   # K
                pltpu.VMEM((block_b, S, D), jnp.bfloat16),   # V
            ],
        ),
        compiler_params=pltpu.CompilerParams(
            dimension_semantics=("parallel", "arbitrary"),
            vmem_limit_bytes=vmem_limit,
        ),
        cost_estimate=cost,
    )(x_bf, w_qkv, b_qkv)


def _init_linear(key, in_features, out_features):
    """Deterministic init mimicking torch.nn.Linear default (uniform +/- 1/sqrt(in))."""
    k_w, k_b = jax.random.split(key)
    bound = 1.0 / math.sqrt(in_features)
    # torch weight is (out, in); store transposed (in, out) for x @ W
    w = jax.random.uniform(k_w, (in_features, out_features), jnp.float32,
                           minval=-bound, maxval=bound)
    b = jax.random.uniform(k_b, (1, out_features), jnp.float32,
                           minval=-bound, maxval=bound)
    return w, b


if __name__ == "__main__":
    B, S, H, D = 2, 8, 32, 16   # batch, seq, hidden_size, attention_head_size

    root = jax.random.PRNGKey(0)
    kx, kq, kk, kv = jax.random.split(root, 4)

    x = jax.random.normal(kx, (B, S, H), jnp.float32)
    wq, bq = _init_linear(kq, H, D)
    wk, bk = _init_linear(kk, H, D)
    wv, bv = _init_linear(kv, H, D)

    attn_out, attn_probs = attention_head(x, wq, bq, wk, bk, wv, bv)
    jax.block_until_ready((attn_out, attn_probs))

    # Pure-JAX f32 reference matching the PyTorch forward (scale by 1/sqrt(D), softmax).
    q_ref = x @ wq + bq
    k_ref = x @ wk + bk
    v_ref = x @ wv + bv
    s_ref = jnp.einsum("bqd,bkd->bqk", q_ref, k_ref) / math.sqrt(D)
    p_ref = jax.nn.softmax(s_ref, axis=-1)
    o_ref = jnp.einsum("bqk,bkd->bqd", p_ref, v_ref)

    # Tolerance is looser than 1e-5 because matmul inputs (and exp on v6e/v7x) are bf16;
    # accumulation, row-sum and normalization remain f32.
    assert jnp.allclose(attn_out, o_ref, atol=2e-2, rtol=2e-2), "attention_output mismatch"
    assert jnp.allclose(attn_probs.astype(jnp.float32), p_ref,
                        atol=2e-2, rtol=2e-2), "attention_probs mismatch"

    print("KERNEL_OK")
</pallas_src>

<mosaic_0001>
module attributes {stable_mosaic.version = 11 : i64} {
  func.func @_attention_head_kernel(%arg0: i32, %arg1: i32, %arg2: memref<2x8x32xbf16, #tpu.memory_space<vmem>>, %arg3: memref<32x48xbf16, #tpu.memory_space<vmem>>, %arg4: memref<1x48xf32, #tpu.memory_space<vmem>>, %arg5: memref<2x8x16xf32, #tpu.memory_space<vmem>>, %arg6: memref<2x8x8xf32, #tpu.memory_space<vmem>>, %arg7: memref<2x8x16xbf16, #tpu.memory_space<vmem>>, %arg8: memref<2x8x16xbf16, #tpu.memory_space<vmem>>, %arg9: memref<2x8x16xbf16, #tpu.memory_space<vmem>>) attributes {dimension_semantics = [#tpu.dimension_semantics<parallel>, #tpu.dimension_semantics<arbitrary>], iteration_bounds = array<i64: 1, 1>, scalar_prefetch = 0 : i64, scratch_operands = 3 : i64, tpu.core_type = #tpu.core_type<tc>, window_params = [{transform_indices = @transform_0, window_bounds = array<i64: 2, 8, 32>}, {pipeline_mode = #tpu.pipeline_mode<synchronous>, transform_indices = @transform_1, window_bounds = array<i64: 32, 48>}, {pipeline_mode = #tpu.pipeline_mode<synchronous>, transform_indices = @transform_2, window_bounds = array<i64: 1, 48>}, {transform_indices = @transform_3, window_bounds = array<i64: 2, 8, 16>}, {transform_indices = @transform_4, window_bounds = array<i64: 2, 8, 8>}]} {
    %c0_i32 = arith.constant 0 : i32
    %0 = arith.cmpi eq, %arg1, %c0_i32 : i32
    %1 = arith.extui %0 : i1 to i32
    %c0_i32_0 = arith.constant 0 : i32
    %2 = arith.cmpi ne, %1, %c0_i32_0 : i32
    scf.if %2 {
      %c0_17 = arith.constant 0 : index
      %c0_18 = arith.constant 0 : index
      %c0_19 = arith.constant 0 : index
      %26 = vector.load %arg2[%c0_17, %c0_18, %c0_19] : memref<2x8x32xbf16, #tpu.memory_space<vmem>>, vector<2x8x32xbf16>
      %c0_20 = arith.constant 0 : index
      %c0_21 = arith.constant 0 : index
      %27 = vector.load %arg3[%c0_20, %c0_21] : memref<32x48xbf16, #tpu.memory_space<vmem>>, vector<32x48xbf16>
      "tpu.trace_start"() <{level = 10 : i32, message = "bsh,hn->bsn"}> : () -> ()
      %cst_22 = arith.constant dense<0.000000e+00> : vector<2x8x48xf32>
      %28 = tpu.matmul %26, %27, %cst_22 {dimension_numbers = #tpu.dot_dimension_numbers<[2], [0], [0, 1], [1], [0, 0, 0, 1, 1, 1], [], []>} : vector<2x8x32xbf16>, vector<32x48xbf16>, vector<2x8x48xf32> -> vector<2x8x48xf32>
      "tpu.trace_stop"() : () -> ()
      %c0_23 = arith.constant 0 : index
      %c0_24 = arith.constant 0 : index
      %29 = vector.load %arg4[%c0_23, %c0_24] : memref<1x48xf32, #tpu.memory_space<vmem>>, vector<1x48xf32>
      %30 = vector.shape_cast %29 : vector<1x48xf32> to vector<1x1x48xf32>
      %31 = vector.broadcast %30 : vector<1x1x48xf32> to vector<2x8x48xf32>
      %32 = arith.addf %28, %31 : vector<2x8x48xf32>
      %33 = arith.truncf %32 : vector<2x8x48xf32> to vector<2x8x48xbf16>
      %34 = vector.extract_strided_slice %33 {offsets = [0, 0, 0], sizes = [2, 8, 16], strides = [1, 1, 1]} : vector<2x8x48xbf16> to vector<2x8x16xbf16>
      %c0_25 = arith.constant 0 : index
      %c0_26 = arith.constant 0 : index
      %c0_27 = arith.constant 0 : index
      %35 = vector.load %arg7[%c0_25, %c0_26, %c0_27] : memref<2x8x16xbf16, #tpu.memory_space<vmem>>, vector<2x8x16xbf16>
      tpu.vector_store %arg7[%c0_25, %c0_26, %c0_27], %34 {strides = array<i32>} : memref<2x8x16xbf16, #tpu.memory_space<vmem>>, vector<2x8x16xbf16>,
      %36 = vector.extract_strided_slice %33 {offsets = [0, 0, 16], sizes = [2, 8, 16], strides = [1, 1, 1]} : vector<2x8x48xbf16> to vector<2x8x16xbf16>
      %c0_28 = arith.constant 0 : index
      %c0_29 = arith.constant 0 : index
      %c0_30 = arith.constant 0 : index
      %37 = vector.load %arg8[%c0_28, %c0_29, %c0_30] : memref<2x8x16xbf16, #tpu.memory_space<vmem>>, vector<2x8x16xbf16>
      tpu.vector_store %arg8[%c0_28, %c0_29, %c0_30], %36 {strides = array<i32>} : memref<2x8x16xbf16, #tpu.memory_space<vmem>>, vector<2x8x16xbf16>,
      %38 = vector.extract_strided_slice %33 {offsets = [0, 0, 32], sizes = [2, 8, 16], strides = [1, 1, 1]} : vector<2x8x48xbf16> to vector<2x8x16xbf16>
      %c0_31 = arith.constant 0 : index
      %c0_32 = arith.constant 0 : index
      %c0_33 = arith.constant 0 : index
      %39 = vector.load %arg9[%c0_31, %c0_32, %c0_33] : memref<2x8x16xbf16, #tpu.memory_space<vmem>>, vector<2x8x16xbf16>
      tpu.vector_store %arg9[%c0_31, %c0_32, %c0_33], %38 {strides = array<i32>} : memref<2x8x16xbf16, #tpu.memory_space<vmem>>, vector<2x8x16xbf16>,
    } else {
    }
    %c8_i32 = arith.constant 8 : i32
    %3 = arith.muli %arg1, %c8_i32 : i32
    %4 = tpu.assume_multiple %3, 8 : i32
    %c0 = arith.constant 0 : index
    %5 = arith.index_cast %4 : i32 to index
    %c0_1 = arith.constant 0 : index
    %6 = vector.load %arg7[%c0, %5, %c0_1] : memref<2x8x16xbf16, #tpu.memory_space<vmem>>, vector<2x8x16xbf16>
    %c0_2 = arith.constant 0 : index
    %c0_3 = arith.constant 0 : index
    %c0_4 = arith.constant 0 : index
    %7 = vector.load %arg8[%c0_2, %c0_3, %c0_4] : memref<2x8x16xbf16, #tpu.memory_space<vmem>>, vector<2x8x16xbf16>
    "tpu.trace_start"() <{level = 10 : i32, message = "bqd,bkd->bqk"}> : () -> ()
    %cst = arith.constant dense<0.000000e+00> : vector<2x8x8xf32>
    %8 = tpu.matmul %6, %7, %cst {dimension_numbers = #tpu.dot_dimension_numbers<[2], [2], [1], [1], [0, 0, 0, 1, 1, 1], [0], [0]>} : vector<2x8x16xbf16>, vector<2x8x16xbf16>, vector<2x8x8xf32> -> vector<2x8x8xf32>
    "tpu.trace_stop"() : () -> ()
    %cst_5 = arith.constant dense<0xFF800000> : vector<2x8xf32>
    %9 = vector.multi_reduction <maximumf>, %8, %cst_5 [2] : vector<2x8x8xf32> to vector<2x8xf32>
    %10 = vector.shape_cast %9 : vector<2x8xf32> to vector<2x8x1xf32>
    %11 = vector.broadcast %10 : vector<2x8x1xf32> to vector<2x8x8xf32>
    %12 = arith.subf %8, %11 : vector<2x8x8xf32>
    %13 = math.exp %12 : vector<2x8x8xf32>
    %cst_6 = arith.constant dense<0.000000e+00> : vector<2x8xf32>
    %14 = vector.multi_reduction <add>, %13, %cst_6 [2] : vector<2x8x8xf32> to vector<2x8xf32>
    %15 = vector.shape_cast %14 : vector<2x8xf32> to vector<2x8x1xf32>
    %16 = tpu.reciprocal %15 : vector<2x8x1xf32> -> vector<2x8x1xf32>
    %17 = arith.truncf %13 : vector<2x8x8xf32> to vector<2x8x8xbf16>
    %c0_7 = arith.constant 0 : index
    %c0_8 = arith.constant 0 : index
    %c0_9 = arith.constant 0 : index
    %18 = vector.load %arg9[%c0_7, %c0_8, %c0_9] : memref<2x8x16xbf16, #tpu.memory_space<vmem>>, vector<2x8x16xbf16>
    "tpu.trace_start"() <{level = 10 : i32, message = "bqk,bkd->bqd"}> : () -> ()
    %cst_10 = arith.constant dense<0.000000e+00> : vector<2x8x16xf32>
    %19 = tpu.matmul %17, %18, %cst_10 {dimension_numbers = #tpu.dot_dimension_numbers<[2], [1], [1], [2], [0, 0, 0, 1, 1, 2], [0], [0]>} : vector<2x8x8xbf16>, vector<2x8x16xbf16>, vector<2x8x16xf32> -> vector<2x8x16xf32>
    "tpu.trace_stop"() : () -> ()
    %20 = vector.broadcast %16 : vector<2x8x1xf32> to vector<2x8x16xf32>
    %21 = arith.mulf %19, %20 : vector<2x8x16xf32>
    %c0_11 = arith.constant 0 : index
    %c0_12 = arith.constant 0 : index
    %c0_13 = arith.constant 0 : index
    %22 = vector.load %arg5[%c0_11, %c0_12, %c0_13] : memref<2x8x16xf32, #tpu.memory_space<vmem>>, vector<2x8x16xf32>
    tpu.vector_store %arg5[%c0_11, %c0_12, %c0_13], %21 {strides = array<i32>} : memref<2x8x16xf32, #tpu.memory_space<vmem>>, vector<2x8x16xf32>,
    %23 = vector.broadcast %16 : vector<2x8x1xf32> to vector<2x8x8xf32>
    %24 = arith.mulf %13, %23 : vector<2x8x8xf32>
    %c0_14 = arith.constant 0 : index
    %c0_15 = arith.constant 0 : index
    %c0_16 = arith.constant 0 : index
    %25 = vector.load %arg6[%c0_14, %c0_15, %c0_16] : memref<2x8x8xf32, #tpu.memory_space<vmem>>, vector<2x8x8xf32>
    tpu.vector_store %arg6[%c0_14, %c0_15, %c0_16], %24 {strides = array<i32>} : memref<2x8x8xf32, #tpu.memory_space<vmem>>, vector<2x8x8xf32>,
    return
  }
  func.func @transform_0(%arg0: i32, %arg1: i32) -> (i32, i32, i32) {
    %c0_i32 = arith.constant 0 : i32
    %c0_i32_0 = arith.constant 0 : i32
    %c0_i32_1 = arith.constant 0 : i32
    return %arg0, %c0_i32, %c0_i32_0 : i32, i32, i32
  }
  func.func @transform_1(%arg0: i32, %arg1: i32) -> (i32, i32) {
    %c0_i32 = arith.constant 0 : i32
    %c0_i32_0 = arith.constant 0 : i32
    %c0_i32_1 = arith.constant 0 : i32
    return %c0_i32, %c0_i32_0 : i32, i32
  }
  func.func @transform_2(%arg0: i32, %arg1: i32) -> (i32, i32) {
    %c0_i32 = arith.constant 0 : i32
    %c0_i32_0 = arith.constant 0 : i32
    %c0_i32_1 = arith.constant 0 : i32
    return %c0_i32, %c0_i32_0 : i32, i32
  }
  func.func @transform_3(%arg0: i32, %arg1: i32) -> (i32, i32, i32) {
    %c0_i32 = arith.constant 0 : i32
    %c0_i32_0 = arith.constant 0 : i32
    return %arg0, %arg1, %c0_i32 : i32, i32, i32
  }
  func.func @transform_4(%arg0: i32, %arg1: i32) -> (i32, i32, i32) {
    %c0_i32 = arith.constant 0 : i32
    %c0_i32_0 = arith.constant 0 : i32
    return %arg0, %arg1, %c0_i32 : i32, i32, i32
  }
}

</mosaic_0001>

<bundles_post_ra>
// kernel: tpu_custom_call.1
= control target key start
LH: loop header
LB: loop body
LE: loop exit
PB: predicated region body
PF: predicated region fallthrough
CT: control target
= control target key end

     0   :  { %10 = vsyncpa [#allocation6], 0  ;;  %s766_s0 = inlined_call_operand.hbm [shape: bf16[2,8,32], index: 0, kind: input, shape index: {}]   ;;  %s767_s1 = inlined_call_operand.hbm [shape: bf16[32,48], index: 1, kind: input, shape index: {}]   ;;  %s768_s2 = inlined_call_operand.hbm [shape: f32[1,48], index: 2, kind: input, shape index: {}]   ;;  %s769_s3 = inlined_call_operand.hbm [shape: f32[2,8,16], index: 3, kind: output, shape index: {0}]   ;;  %s770_s4 = inlined_call_operand.hbm [shape: f32[2,8,8], index: 4, kind: output, shape index: {1}]  }
   0x1   :  { %11 = vsyncpa [#allocation9], 0 }
   0x2   :  { %12 = vsyncpa [#allocation7], 0 }
   0x3   :  { %13 = vsyncpa [#allocation13], 0  ;;  %s626_s15 = smov [#allocation8]   ;;  %s627_s17 = smov [#allocation5]  }
   0x4   :  { %s31_s16 = sshll.u32 %s626_s15, 4  ;;  %s19_s18 = sshll.u32 %s627_s17, 4  ;;  %s32_s16 = int_to_ptr.vmem [resolvable:$true] %s31_s16  ;;  %s664_s18 = int_to_ptr.vmem [resolvable:$true] %s19_s18 }
   0x5   :  { %s508_s21 = scalar_lea.hbm %s767_s1, 256 }
   0x6   :  { %p509_p0 = scmp.ne.s32.totalorder %s767_s1, %s508_s21  ;;  %p512_p1 = scmp.lt.u32.totalorder %s508_s21, %s767_s1 }
   0x8   :  { %p514_p2 = pnand %p512_p1, %p509_p0 }
   0xa   :  { %517 = shalt.err (!%p514_p2)
}
   0xb   :  { %s518_s26 = scalar_lea.vmem %s32_s16, 256  ;;  %p523_p4 = scmp.lt.s32.totalorder %s32_s16, %s32_s16 }
   0xc   :  { %p519_p3 = scmp.ne.s32.totalorder %s32_s16, %s518_s26  ;;  %p524_p5 = scmp.lt.s32.totalorder %s518_s26, %s518_s26 }
   0xe   :  { %p525_p6 = por %p524_p5, %p523_p4 }
  0x10   :  { %p526_p7 = pnand %p525_p6, %p519_p3 }
  0x12   :  { %529 = shalt.err (!%p526_p7)
}
  0x13   :  { %s628_s27 = smov 64   ;;  %s629_s28 = smov 4  }
  0x14   :  { %37 = dma.hbm_to_vmem [thread:$0]  %s767_s1, 256, %s32_s16, [#allocation9], %s628_s27, %s628_s27, %s629_s28  }
  0x15   :  { %s530_s7 = scalar_lea.hbm %s766_s0, 128 }
  0x16   :  { %p531_p8 = scmp.ne.s32.totalorder %s766_s0, %s530_s7  ;;  %p534_p9 = scmp.lt.u32.totalorder %s530_s7, %s766_s0 }
  0x18   :  { %p536_p10 = pnand %p534_p9, %p531_p8 }
  0x1a   :  { %539 = shalt.err (!%p536_p10)
}
  0x1b   :  { %s540_s12 = scalar_lea.vmem %s664_s18, 128  ;;  %p545_p12 = scmp.lt.s32.totalorder %s664_s18, %s664_s18 }
  0x1c   :  { %p541_p11 = scmp.ne.s32.totalorder %s664_s18, %s540_s12  ;;  %p546_p13 = scmp.lt.s32.totalorder %s540_s12, %s540_s12 }
  0x1e   :  { %p547_p0 = por %p546_p13, %p545_p12 }
  0x20   :  { %p548_p1 = pnand %p547_p0, %p541_p11 }
  0x22   :  { %551 = shalt.err (!%p548_p1)
}
  0x23   :  { %25 = dma.hbm_to_vmem [thread:$0]  %s766_s0, 128, %s664_s18, [#allocation6], %s628_s27, %s628_s27, %s629_s28  }
  0x24   :  { %s630_s14 = smov [#allocation10]   ;;  %s552_s19 = scalar_lea.hbm %s768_s2, 16 }
  0x25   :  { %s44_s15 = sshll.u32 %s630_s14, 4  ;;  %p553_p2 = scmp.ne.s32.totalorder %s768_s2, %s552_s19  ;;  %s45_s15 = int_to_ptr.vmem [resolvable:$true] %s44_s15 }
  0x26   :  { %p556_p3 = scmp.lt.u32.totalorder %s552_s19, %s768_s2 }
  0x28   :  { %p558_p4 = pnand %p556_p3, %p553_p2 }
  0x2a   :  { %561 = shalt.err (!%p558_p4)
}
  0x2b   :  { %s562_s24 = scalar_lea.vmem %s45_s15, 16  ;;  %s566_s0 = scalar_lea.vmem %s45_s15, 32 }
  0x2c   :  { %p563_p5 = scmp.ne.s32.totalorder %s45_s15, %s562_s24  ;;  %p567_p6 = scmp.lt.s32.totalorder %s45_s15, %s45_s15 }
  0x2d   :  { %p568_p7 = scmp.lt.s32.totalorder %s566_s0, %s562_s24 }
  0x2f   :  { %p569_p8 = por %p568_p7, %p567_p6 }
  0x31   :  { %p570_p9 = pnand %p569_p8, %p563_p5 }
  0x33   :  { %573 = shalt.err (!%p570_p9)
}
  0x34   :  { %47 = dma.hbm_to_vmem [thread:$0]  %s768_s2, 16, %s45_s15, [#allocation9]  }
  0x35   :  { %618 = dma.done.wait [#allocation6], 128  }
  0x36   :  { %619 = vsyncadd [#allocation6], 4294967168 }
  0x37   :  { %620 = dma.done.wait [#allocation9], 272  }
  0x38   :  { %621 = vsyncadd [#allocation9], 4294967024  ;;  %v631_v0 = vmov 0.0   ;;  %vm632_vm0 = vmmov 0   ;;  %v497_v1 = vld [vmem:[#allocation8] sm:$0xff]   ;;  %v498_v2 = vld [vmem:[#allocation8 + $0x8] sm:$0xff]  }
  0x39   :  { %452 = vmatprep.subr.bf16.mxu0 %v631_v0  ;;  %456 = vmatprep.mubr.msk.bf16.mxu0 %vm632_vm0, %v631_v0  ;;  %v499_v3 = vld [vmem:[#allocation5] sm:$0xff]   ;;  %vm92_vm1 = vcmask 261120   ;;  %v428_v4 = vld [vmem:[#allocation10] ss:$0 sm:$0xff]  ;;  %vm139_vm2 = vcmask 125952   ;;  %s633_s2 = smov 112  }
  0x3a   :  { %460 = vmatprep.subr.bf16.mxu1 %v631_v0  ;;  %462 = vmatprep.mubr.msk.bf16.mxu1 %vm632_vm0, %v631_v0  ;;  %s634_s26 = smov 96   ;;  %vm173_vm3 = vcmask 130048   ;;  %vm294_vm4 = vcmask 1043456   ;;  %vm266_vm5 = vcmask 64512   ;;  %s635_s27 = smov [#allocation12]  }
  0x3b   :  { %453 = vmatpush3.bf16.msra.mxu0 %v497_v1  ;;  %s409_s28 = sshll.u32 %s635_s27, 4  ;;  %s410_s28 = int_to_ptr.vmem [resolvable:$true] %s409_s28 }
  0x3c   :  { %454 = vmatprep.subr.bf16.mxu0 %v631_v0  ;;  %s574_s29 = scalar_lea.vmem %s410_s28, 256  ;;  %p579_p11 = scmp.lt.s32.totalorder %s410_s28, %s410_s28 }
  0x3d   :  { %p575_p10 = scmp.ne.s32.totalorder %s410_s28, %s574_s29  ;;  %p580_p12 = scmp.lt.s32.totalorder %s574_s29, %s574_s29 }
  0x3f   :  { %455 = vmatpush3.bf16.msra.mxu0 %v498_v2  ;;  %p581_p13 = por %p580_p12, %p579_p11 }
  0x40   :  { %466 = vmatprep.subr.bf16.mxu0 %v631_v0 }
  0x41   :  { %p582_p0 = pnand %p581_p13, %p575_p10 }
  0x42   :  { %457 = vmatmul.mubr.msk.bf16.vlgmr.msra.gmra.mrb[0].mxu0 %vm92_vm1, %v499_v3 }
  0x43   :  { %468 = vmatprep.mubr.msk.bf16.mxu0 %vm632_vm0, %v631_v0 }
 0x115   :  { %v130_v5 = vpop.f32.mrb[0].mxu0 }
 0x116   :  { %v131_v6 = vadd.f32 %v428_v4, %v130_v5  ;;  %v458_v7 = vpop.f32.mrb[1].mxu0 }
 0x117   :  { %v133_v8 = vpop.f32.mrb[2].mxu0 }
 0x118   :  { %v137_v9 = vpack.c.bf16 %v131_v6, %v131_v6  ;;  %v134_v10 = vadd.f32 %v428_v4, %v133_v8  ;;  %v459_v11 = vpop.f32.mrb[3].mxu0 }
 0x11a   :  { %140 = vst.msk [vmem:[#allocation2] sm:$0xf] %vm139_vm2, %v137_v9  ;;  %v138_v12 = vpack.c.bf16 %v134_v10, %v134_v10  ;;  %148 = vrot.lane.b32.xlu0 %v137_v9, %s633_s2 }
 0x11c   :  { %141 = vst.msk [vmem:[#allocation2 + $0x4] sm:$0xf] %vm139_vm2, %v138_v12 }
 0x11e   :  { %150 = vrot.lane.b32.xlu0 %v138_v12, %s633_s2 }
 0x121   :  { %v169_v20 = vld [vmem:[#allocation2] sm:$0xf] }
 0x122   :  { %156 = vrot.lane.b32.xlu0 %v137_v9, %s634_s26 }
 0x123   :  { %v170_v23 = vld [vmem:[#allocation2 + $0x4] sm:$0xf] }
 0x18c   :  { %v149_v13 = vpop.permute.xlu0 %148 }
 0x18d   :  { %154 = vst.msk [vmem:[#allocation3] sm:$0xf] %vm139_vm2, %v149_v13 }
 0x190   :  { %v151_v14 = vpop.permute.xlu0 %150 }
 0x191   :  { %155 = vst.msk [vmem:[#allocation3 + $0x4] sm:$0xf] %vm139_vm2, %v151_v14 }
 0x194   :  { %v157_v15 = vpop.permute.xlu0 %156  ;;  %v171_v16 = vld [vmem:[#allocation3] sm:$0xf] }
 0x195   :  { %162 = vst.msk [vmem:[#allocation4] sm:$0xf] %vm139_vm2, %v157_v15  ;;  %v178_v17 = vsel %vm173_vm3, %v171_v16, 0 }
 0x196   :  { %461 = vmatpush3.bf16.xpose.msra.mxu1 %v178_v17 }
 0x197   :  { %472 = vmatprep.subr.bf16.mxu1 %v631_v0 }
 0x198   :  { %v172_v18 = vld [vmem:[#allocation3 + $0x4] sm:$0xf] }
 0x199   :  { %v224_v19 = vsel %vm173_vm3, %v172_v18, 0 }
 0x19a   :  { %467 = vmatpush3.bf16.xpose.msra.mxu0 %v224_v19 }
 0x19b   :  { %478 = vmatprep.subr.bf16.mxu0 %v631_v0 }
 0x19c   :  { %v289_v21 = vld [vmem:[#allocation4] sm:$0xf] }
 0x19d   :  { %463 = vmatmul.mubr.msk.bf16.vlgmr.msra.gmra.mrb[0].mxu1 %vm173_vm3, %v169_v20  ;;  %v296_v22 = vsel %vm294_vm4, %v289_v21, 0 }
 0x19e   :  { %473 = vmatpush3.bf16.msra.mxu1 %v296_v22  ;;  %474 = vmatprep.mubr.msk.bf16.mxu1 %vm632_vm0, %v631_v0 }
 0x1a1   :  { %469 = vmatmul.mubr.msk.bf16.vlgmr.msra.gmra.mrb[4].mxu0 %vm173_vm3, %v170_v23 }
 0x1a2   :  { %480 = vmatprep.mubr.msk.bf16.mxu0 %vm632_vm0, %v631_v0 }
 0x270   :  { %v214_v24 = vpop.f32.mrb[0].mxu1 }
 0x271   :  { %v464_v25 = vpop.f32.mrb[1].mxu1  ;;  %v267_v26 = vsel %vm266_vm5, %v214_v24, -inf }
 0x272   :  { %268 = vmax.xlane.f32.xlu1 %v267_v26  ;;  %v217_v27 = vpop.f32.mrb[2].mxu1 }
 0x273   :  { %v465_v28 = vpop.f32.mrb[3].mxu1 }
 0x274   :  { %v260_v29 = vpop.f32.mrb[4].mxu0 }
 0x275   :  { %v470_v30 = vpop.f32.mrb[5].mxu0  ;;  %v270_v31 = vsel %vm266_vm5, %v260_v29, -inf }
 0x276   :  { %271 = vmax.xlane.f32.xlu1 %v270_v31  ;;  %v263_v32 = vpop.f32.mrb[6].mxu0 }
 0x277   :  { %v471_v33 = vpop.f32.mrb[7].mxu0 }
 0x287   :  { %158 = vrot.lane.b32.xlu1 %v138_v12, %s634_s26 }
 0x2ff   :  { %v269_v34 = vpop.xlane.xlu1 %268 }
 0x300   :  { %v273_v35 = vsub.f32 %v214_v24, %v269_v34 }
 0x302   :  { %v275_v36 = vmul.f32 1.442695, %v273_v35 }
 0x303   :  { %v272_v37 = vpop.xlane.xlu1 %271 }
 0x304   :  { %500 = vpow2.f32 %v275_v36  ;;  %v274_v38 = vsub.f32 %v260_v29, %v272_v37 }
 0x306   :  { %v277_v39 = vmul.f32 1.442695, %v274_v38 }
 0x307   :  { %v159_v40 = vpop.permute.xlu1 %158 }
 0x308   :  { %502 = vpow2.f32 %v277_v39  ;;  %163 = vst.msk [vmem:[#allocation4 + $0x4] sm:$0xf] %vm139_vm2, %v159_v40 }
 0x30e   :  { %v501_v41 = vpop.eup %500 }
 0x30f   :  { %v279_v42 = vsel %vm266_vm5, %v501_v41, 0.0  ;;  %v287_v43 = vpack.c.bf16 %v501_v41, %v501_v41  ;;  %v290_v44 = vld [vmem:[#allocation4 + $0x4] sm:$0xf] }
 0x310   :  { %280 = vadd.xlane.f32.xlu0 %v279_v42  ;;  %v342_v45 = vsel %vm294_vm4, %v290_v44, 0 }
 0x311   :  { %475 = vmatmul.mubr.msk.bf16.vlgmr.msra.gmra.mrb[4].mxu1 %vm266_vm5, %v287_v43  ;;  %479 = vmatpush3.bf16.msra.mxu0 %v342_v45 }
 0x312   :  { %v503_v46 = vpop.eup %502 }
 0x313   :  { %v282_v47 = vsel %vm266_vm5, %v503_v46, 0.0  ;;  %v288_v48 = vpack.c.bf16 %v503_v46, %v503_v46 }
 0x314   :  { %283 = vadd.xlane.f32.xlu1 %v282_v47 }
 0x315   :  { %481 = vmatmul.mubr.msk.bf16.vlgmr.msra.gmra.mrb[8].mxu0 %vm266_vm5, %v288_v48 }
 0x39d   :  { %v281_v49 = vpop.xlane.xlu0 %280 }
 0x39e   :  { %504 = vrcp.f32 %v281_v49 }
 0x3a1   :  { %v284_v50 = vpop.xlane.xlu1 %283 }
 0x3a2   :  { %506 = vrcp.f32 %v284_v50 }
 0x3a8   :  { %v505_v51 = vpop.eup %504 }
 0x3a9   :  { %v388_v52 = vmul.f32 %v505_v51, %v501_v41 }
 0x3ab   :  { %390 = vst.msk [vmem:[#allocation12] sm:$0xff] %vm266_vm5, %v388_v52 }
 0x3ac   :  { %v507_v53 = vpop.eup %506 }
 0x3ad   :  { %v389_v54 = vmul.f32 %v507_v53, %v503_v46 }
 0x3af   :  { %391 = vst.msk [vmem:[#allocation12 + $0x8] sm:$0xff] %vm266_vm5, %v389_v54 }
 0x3b0   :  { %585 = shalt.err (!%p582_p0)
}
 0x3b1   :  { %s586_s6 = scalar_lea.hbm %s770_s4, 256 }
 0x3b2   :  { %p587_p1 = scmp.ne.s32.totalorder %s770_s4, %s586_s6  ;;  %p590_p2 = scmp.lt.u32.totalorder %s586_s6, %s770_s4 }
 0x3b4   :  { %p592_p3 = pnand %p590_p2, %p587_p1 }
 0x3b6   :  { %595 = shalt.err (!%p592_p3)
}
 0x3b7   :  { %s636_s11 = smov 128   ;;  %s637_s12 = smov 8  }
 0x3b8   :  { %415 = dma.vmem_to_hbm [thread:$0]  %s410_s28, 256, %s770_s4, [#allocation13], %s636_s11, %s636_s11, %s637_s12  }
 0x3b9   :  { %s638_s14 = smov [#allocation11]  }
 0x3ba   :  { %s397_s15 = sshll.u32 %s638_s14, 4  ;;  %s398_s15 = int_to_ptr.vmem [resolvable:$true] %s397_s15 }
 0x3bb   :  { %s596_s16 = scalar_lea.vmem %s398_s15, 256  ;;  %p601_p5 = scmp.lt.s32.totalorder %s398_s15, %s398_s15 }
 0x3bc   :  { %p597_p4 = scmp.ne.s32.totalorder %s398_s15, %s596_s16  ;;  %p602_p6 = scmp.lt.s32.totalorder %s596_s16, %s596_s16 }
 0x3be   :  { %p603_p7 = por %p602_p6, %p601_p5 }
 0x3c0   :  { %p604_p8 = pnand %p603_p7, %p597_p4 }
 0x3e4   :  { %v332_v55 = vpop.f32.mrb[4].mxu1 }
 0x3e5   :  { %v384_v56 = vmul.f32 %v505_v51, %v332_v55  ;;  %v476_v57 = vpop.f32.mrb[5].mxu1 }
 0x3e6   :  { %v335_v58 = vpop.f32.mrb[6].mxu1 }
 0x3e7   :  { %386 = vst.msk [vmem:[#allocation11] sm:$0xff] %vm173_vm3, %v384_v56  ;;  %v477_v59 = vpop.f32.mrb[7].mxu1 }
 0x3e8   :  { %v378_v60 = vpop.f32.mrb[8].mxu0 }
 0x3e9   :  { %v385_v61 = vmul.f32 %v507_v53, %v378_v60  ;;  %v482_v62 = vpop.f32.mrb[9].mxu0 }
 0x3ea   :  { %v381_v63 = vpop.f32.mrb[10].mxu0 }
 0x3eb   :  { %387 = vst.msk [vmem:[#allocation11 + $0x8] sm:$0xff] %vm173_vm3, %v385_v61  ;;  %v483_v0 = vpop.f32.mrb[11].mxu0 }
 0x3ec   :  { %607 = shalt.err (!%p604_p8)
}
 0x3ed   :  { %s608_s19 = scalar_lea.hbm %s769_s3, 256 }
 0x3ee   :  { %p609_p9 = scmp.ne.s32.totalorder %s769_s3, %s608_s19  ;;  %p612_p10 = scmp.lt.u32.totalorder %s608_s19, %s769_s3 }
 0x3f0   :  { %p614_p11 = pnand %p612_p10, %p609_p9 }
 0x3f2   :  { %617 = shalt.err (!%p614_p11)
}
 0x3f3   :  { %403 = dma.vmem_to_hbm [thread:$0]  %s398_s15, 256, %s769_s3, [#allocation7], %s636_s11, %s636_s11, %s637_s12  }
 0x3f4   :  { %622 = dma.done.wait [#allocation7], 256  }
 0x3f5   :  { %623 = vsyncadd [#allocation7], 4294967040 }
 0x3f6   :  { %624 = dma.done.wait [#allocation13], 256  }
 0x3f7   :  { %625 = vsyncadd [#allocation13], 4294967040 }
 0x3f8   :  { %422 = vsyncpa [#allocation6], 1 }
 0x3f9   :  { %423 = vsyncpa [#allocation9], 1 }
 0x3fa   :  { %424 = vsyncpa [#allocation7], 1 }
 0x3fb   :  { %425 = vsyncpa [#allocation13], 1 }

</bundles_post_ra>
